<compile_context>
chip_gen: v6e
topology: v6e:2x2x1
jax: 0.10.0
libtpu: 0.0.40
codegen_flags: <defaults>
</compile_context>

<pallas_src>
import functools

import jax
import jax.numpy as jnp
from jax.experimental import pallas as pl
from jax.experimental.pallas import tpu as pltpu

BN_EPS = 1e-5
LEAKY_SLOPE = 0.2


def _make_stack_kernel(N, C, T, dilations):
    """Entire Stack (all blocks) as a single Pallas kernel on a (C, N*T) slab."""
    NT = N * T
    inv_nt = 1.0 / NT

    def kernel(x_ref, w_ref, b_ref, g_ref, beta_ref, out_ref):
        # x_ref    : (C, N*T)      activation slab (channels=sublanes, (n,t)=lanes)
        # w_ref    : (L, C, 3C)    folded weights [w2@w1[0] | w2@w1[1]+I | w2@w1[2]]
        # b_ref    : (L, C, 1)     folded bias  w2@b1 + b2
        # g_ref    : (L, C, 1)     BatchNorm gamma
        # beta_ref : (L, C, 1)     BatchNorm beta
        # out_ref  : (C, N*T)

        # time index (within each batch element) of every lane column -- hoisted
        t_idx = jax.lax.broadcasted_iota(jnp.int32, (1, NT), 1) % T
        a = x_ref[...]                                            # block input (C, NT)

        for l, d in enumerate(dilations):
            # Shifted taps via circular lane rotation (XLU) + boundary masks.
            # The masks are load-bearing: they zero both the time-boundary taps and the
            # lanes where the circular roll wraps across batch elements.
            x_m = jnp.where(t_idx >= d,
                            pltpu.roll(a, shift=d, axis=1), 0.0)        # x[t-d]
            x_p = jnp.where(t_idx < T - d,
                            pltpu.roll(a, shift=NT - d, axis=1), 0.0)   # x[t+d]

            # One K=3C matmul for all three taps; the residual is folded into the
            # center-tap weight, the 1x1 conv into w_eff / b_eff.
            x_cat = jnp.concatenate([x_m, a, x_p], axis=0)              # (3C, NT)
            y = jnp.dot(w_ref[l], x_cat,
                        preferred_element_type=jnp.float32) + b_ref[l]  # (C, NT)

            # leaky relu (exact for slope in (0,1)): mul + max
            y = jnp.maximum(y, LEAKY_SLOPE * y)

            # One-pass BatchNorm1d (training-mode batch statistics over (N,T), which is
            # exactly the lane axis of the slab). var = E[y^2] - mean^2; applied as one FMA
            # with the mean folded into the shift.
            mean = jnp.sum(y, axis=-1, keepdims=True) * inv_nt          # (C, 1)
            ex2 = jnp.sum(y * y, axis=-1, keepdims=True) * inv_nt       # (C, 1)
            var = ex2 - mean * mean
            scale = g_ref[l] * jax.lax.rsqrt(var + BN_EPS)              # (C, 1)
            a = y * scale + (beta_ref[l] - mean * scale)                # next block's input

        out_ref[...] = a

    return kernel


def stack_forward(x, all_params, dilations):
    """x: (N, C, T) float32; all_params: list of per-block parameter dicts."""
    N, C, T = x.shape
    dilations = tuple(int(d) for d in dilations)

    # Fold the 1x1 conv into the dilated conv and the residual into the center tap
    # (exact algebra: no nonlinearity between conv1, conv2 and the residual add).
    eye = jnp.eye(C, dtype=jnp.float32)
    w_eff = jnp.stack([
        jnp.concatenate([p["w2"] @ p["w1"][0],
                         p["w2"] @ p["w1"][1] + eye,
                         p["w2"] @ p["w1"][2]], axis=1)                    # (C, 3C)
        for p in all_params])                                              # (L, C, 3C)
    b_eff = jnp.stack([p["w2"] @ p["b1"] + p["b2"] for p in all_params])   # (L, C, 1)
    gamma = jnp.stack([p["gamma"] for p in all_params])                    # (L, C, 1)
    beta = jnp.stack([p["beta"] for p in all_params])                      # (L, C, 1)

    # Lane-dense slab: channels on sublanes, (batch, time) on lanes (wrapper-side layout
    # plumbing only -- all compute happens in the kernel).
    x_slab = jnp.transpose(x, (1, 0, 2)).reshape(C, N * T)

    vmem = pl.BlockSpec(memory_space=pltpu.MemorySpace.VMEM)
    # TODO(synk): at production sizes (large C, long T) tile the N*T lane axis with a grid
    # ("parallel" dimension_semantics, per-tile BN partial sums + finalize step) and raise
    # vmem_limit_bytes; needed to fit v7x's 64 MiB VMEM and to use its 2 TensorCores, and it
    # also restores BlockSpec double-buffered DMA<->compute overlap. Unnecessary here.
    out_slab = pl.pallas_call(
        _make_stack_kernel(N, C, T, dilations),
        out_shape=jax.ShapeDtypeStruct((C, N * T), jnp.float32),
        in_specs=[vmem] * 5,
        out_specs=vmem,
    )(x_slab, w_eff, b_eff, gamma, beta)

    return jnp.transpose(out_slab.reshape(C, N, T), (1, 0, 2))


# ---------------------- pure-JAX reference (for self-check) ----------------------
def block_ref(x, p, d):
    N, C, T = x.shape
    xpad = jnp.pad(x, ((0, 0), (0, 0), (d, d)))
    y1 = sum(jnp.einsum("oi,nit->not", p["w1"][k], xpad[:, :, k * d:k * d + T])
             for k in range(3)) + p["b1"][None]
    y2 = jnp.einsum("oi,nit->not", p["w2"], y1) + p["b2"][None]
    y = y2 + x
    y = jnp.where(y >= 0, y, LEAKY_SLOPE * y)
    mean = jnp.mean(y, axis=(0, 2), keepdims=True)
    var = jnp.mean((y - mean) ** 2, axis=(0, 2), keepdims=True)
    return p["gamma"][None] * (y - mean) * jax.lax.rsqrt(var + BN_EPS) + p["beta"][None]


def stack_ref(x, all_params, dilations):
    for p, d in zip(all_params, dilations):
        x = block_ref(x, p, d)
    return x


# ---------------------- deterministic parameter init ----------------------
def init_block_params(key, C):
    k1, k2, k3, k4, k5, k6 = jax.random.split(key, 6)
    scale3 = 1.0 / jnp.sqrt(3.0 * C)   # ~PyTorch Conv1d uniform bound, k=3
    scale1 = 1.0 / jnp.sqrt(1.0 * C)   # k=1
    return {
        # stored as (3, C, C) with w1[k, o, i]
        "w1": jax.random.uniform(k1, (3, C, C), jnp.float32, -scale3, scale3),
        "b1": jax.random.uniform(k2, (C, 1), jnp.float32, -scale3, scale3),
        "w2": jax.random.uniform(k3, (C, C), jnp.float32, -scale1, scale1),
        "b2": jax.random.uniform(k4, (C, 1), jnp.float32, -scale1, scale1),
        # BatchNorm affine (perturbed from the PyTorch default to keep the path non-trivial)
        "gamma": 1.0 + 0.1 * jax.random.normal(k5, (C, 1), jnp.float32),
        "beta": 0.1 * jax.random.normal(k6, (C, 1), jnp.float32),
    }


# TODO(synk): training-mode BatchNorm running_mean/running_var buffer updates are not
# emitted; only the forward output is produced (matches the module's forward return value).

if __name__ == "__main__":
    N, C, T = 2, 8, 128
    dilations = (1, 2, 4)

    key = jax.random.PRNGKey(0)
    kx, *pkeys = jax.random.split(key, 1 + len(dilations))
    x = jax.random.normal(kx, (N, C, T), jnp.float32)
    params = [init_block_params(k, C) for k in pkeys]

    out = jax.jit(functools.partial(stack_forward, dilations=dilations))(x, params)
    out = jax.block_until_ready(out)

    ref = stack_ref(x, params, dilations)
    assert out.shape == (N, C, T)
    assert jnp.allclose(out, ref, atol=5e-4, rtol=5e-4), "mismatch vs JAX reference"

    print("KERNEL_OK")
</pallas_src>

<mosaic_0001>
module attributes {stable_mosaic.version = 11 : i64} {
  func.func @kernel(%arg0: memref<8x256xf32, #tpu.memory_space<vmem>>, %arg1: memref<3x8x24xf32, #tpu.memory_space<vmem>>, %arg2: memref<3x8x1xf32, #tpu.memory_space<vmem>>, %arg3: memref<3x8x1xf32, #tpu.memory_space<vmem>>, %arg4: memref<3x8x1xf32, #tpu.memory_space<vmem>>, %arg5: memref<8x256xf32, #tpu.memory_space<vmem>>) attributes {dimension_semantics = [], scalar_prefetch = 0 : i64, scratch_operands = 0 : i64, tpu.core_type = #tpu.core_type<tc>} {
    %0 = tpu.iota {dimensions = array<i32: 1>} : vector<1x256xi32>
    %c128_i32 = arith.constant 128 : i32
    %c0_i32 = arith.constant 0 : i32
    %1 = arith.cmpi eq, %c128_i32, %c0_i32 : i32
    %c1_i32 = arith.constant 1 : i32
    %2 = arith.select %1, %c1_i32, %c128_i32 : i32
    %3 = vector.broadcast %2 : i32 to vector<1x256xi32>
    %4 = arith.remsi %0, %3 : vector<1x256xi32>
    %c0_i32_0 = arith.constant 0 : i32
    %5 = vector.broadcast %c0_i32_0 : i32 to vector<1x256xi32>
    %6 = arith.cmpi ne, %4, %5 : vector<1x256xi32>
    %c0_i32_1 = arith.constant 0 : i32
    %7 = vector.broadcast %c0_i32_1 : i32 to vector<1x256xi32>
    %8 = arith.cmpi slt, %4, %7 : vector<1x256xi32>
    %c0_i32_2 = arith.constant 0 : i32
    %9 = arith.cmpi slt, %2, %c0_i32_2 : i32
    %10 = vector.broadcast %9 : i1 to vector<1x256xi1>
    %11 = vector.broadcast %10 : vector<1x256xi1> to vector<1x256xi1>
    %12 = arith.xori %8, %11 : vector<1x256xi1>
    %13 = arith.andi %12, %6 : vector<1x256xi1>
    %14 = vector.broadcast %2 : i32 to vector<1x256xi32>
    %15 = arith.addi %4, %14 : vector<1x256xi32>
    %16 = arith.select %13, %15, %4 : vector<1x256xi1>, vector<1x256xi32>
    %c0 = arith.constant 0 : index
    %c0_3 = arith.constant 0 : index
    %17 = vector.load %arg0[%c0, %c0_3] : memref<8x256xf32, #tpu.memory_space<vmem>>, vector<8x256xf32>
    %c1_i32_4 = arith.constant 1 : i32
    %18 = vector.broadcast %c1_i32_4 : i32 to vector<1x256xi32>
    %19 = arith.cmpi sge, %16, %18 : vector<1x256xi32>
    %c1_i32_5 = arith.constant 1 : i32
    %20 = tpu.dynamic_rotate %17 by %c1_i32_5 dim 1 : vector<8x256xf32>, i32 -> vector<8x256xf32>
    %cst = arith.constant 0.000000e+00 : f32
    %21 = vector.shape_cast %19 : vector<1x256xi1> to vector<1x256xi1>
    %22 = vector.broadcast %21 : vector<1x256xi1> to vector<8x256xi1>
    %23 = vector.broadcast %cst : f32 to vector<8x256xf32>
    %24 = arith.select %22, %20, %23 : vector<8x256xi1>, vector<8x256xf32>
    %c127_i32 = arith.constant 127 : i32
    %25 = vector.broadcast %c127_i32 : i32 to vector<1x256xi32>
    %26 = arith.cmpi slt, %16, %25 : vector<1x256xi32>
    %c255_i32 = arith.constant 255 : i32
    %27 = tpu.dynamic_rotate %17 by %c255_i32 dim 1 : vector<8x256xf32>, i32 -> vector<8x256xf32>
    %cst_6 = arith.constant 0.000000e+00 : f32
    %28 = vector.shape_cast %26 : vector<1x256xi1> to vector<1x256xi1>
    %29 = vector.broadcast %28 : vector<1x256xi1> to vector<8x256xi1>
    %30 = vector.broadcast %cst_6 : f32 to vector<8x256xf32>
    %31 = arith.select %29, %27, %30 : vector<8x256xi1>, vector<8x256xf32>
    %32 = tpu.concatenate %24, %17, %31 in 0 : vector<8x256xf32>, vector<8x256xf32>, vector<8x256xf32> -> vector<24x256xf32>
    %c0_7 = arith.constant 0 : index
    %c0_8 = arith.constant 0 : index
    %c0_9 = arith.constant 0 : index
    %33 = vector.load %arg1[%c0_7, %c0_8, %c0_9] : memref<3x8x24xf32, #tpu.memory_space<vmem>>, vector<1x8x24xf32>
    %34 = vector.shape_cast %33 : vector<1x8x24xf32> to vector<8x24xf32>
    %cst_10 = arith.constant dense<0.000000e+00> : vector<8x256xf32>
    %35 = tpu.matmul %34, %32, %cst_10 {dimension_numbers = #tpu.dot_dimension_numbers<[1], [0], [0], [1], [0, 0, 1, 1], [], []>} : vector<8x24xf32>, vector<24x256xf32>, vector<8x256xf32> -> vector<8x256xf32>
    %c0_11 = arith.constant 0 : index
    %c0_12 = arith.constant 0 : index
    %c0_13 = arith.constant 0 : index
    %36 = vector.load %arg2[%c0_11, %c0_12, %c0_13] : memref<3x8x1xf32, #tpu.memory_space<vmem>>, vector<1x8x1xf32>
    %37 = vector.shape_cast %36 : vector<1x8x1xf32> to vector<8x1xf32>
    %38 = vector.broadcast %37 : vector<8x1xf32> to vector<8x256xf32>
    %39 = arith.addf %35, %38 : vector<8x256xf32>
    %cst_14 = arith.constant 2.000000e-01 : f32
    %40 = vector.broadcast %cst_14 : f32 to vector<8x256xf32>
    %41 = arith.mulf %40, %39 : vector<8x256xf32>
    %42 = arith.maximumf %39, %41 : vector<8x256xf32>
    %cst_15 = arith.constant dense<0.000000e+00> : vector<8xf32>
    %43 = vector.multi_reduction <add>, %42, %cst_15 [1] : vector<8x256xf32> to vector<8xf32>
    %44 = vector.shape_cast %43 : vector<8xf32> to vector<8x1xf32>
    %cst_16 = arith.constant 3.906250e-03 : f32
    %45 = vector.broadcast %cst_16 : f32 to vector<8x1xf32>
    %46 = arith.mulf %44, %45 : vector<8x1xf32>
    %47 = arith.mulf %42, %42 : vector<8x256xf32>
    %cst_17 = arith.constant dense<0.000000e+00> : vector<8xf32>
    %48 = vector.multi_reduction <add>, %47, %cst_17 [1] : vector<8x256xf32> to vector<8xf32>
    %49 = vector.shape_cast %48 : vector<8xf32> to vector<8x1xf32>
    %cst_18 = arith.constant 3.906250e-03 : f32
    %50 = vector.broadcast %cst_18 : f32 to vector<8x1xf32>
    %51 = arith.mulf %49, %50 : vector<8x1xf32>
    %52 = arith.mulf %46, %46 : vector<8x1xf32>
    %53 = arith.subf %51, %52 : vector<8x1xf32>
    %c0_19 = arith.constant 0 : index
    %c0_20 = arith.constant 0 : index
    %c0_21 = arith.constant 0 : index
    %54 = vector.load %arg3[%c0_19, %c0_20, %c0_21] : memref<3x8x1xf32, #tpu.memory_space<vmem>>, vector<1x8x1xf32>
    %55 = vector.shape_cast %54 : vector<1x8x1xf32> to vector<8x1xf32>
    %cst_22 = arith.constant 9.99999974E-6 : f32
    %56 = vector.broadcast %cst_22 : f32 to vector<8x1xf32>
    %57 = arith.addf %53, %56 : vector<8x1xf32>
    %58 = math.rsqrt %57 : vector<8x1xf32>
    %59 = arith.mulf %55, %58 : vector<8x1xf32>
    %60 = vector.broadcast %59 : vector<8x1xf32> to vector<8x256xf32>
    %61 = arith.mulf %42, %60 : vector<8x256xf32>
    %c0_23 = arith.constant 0 : index
    %c0_24 = arith.constant 0 : index
    %c0_25 = arith.constant 0 : index
    %62 = vector.load %arg4[%c0_23, %c0_24, %c0_25] : memref<3x8x1xf32, #tpu.memory_space<vmem>>, vector<1x8x1xf32>
    %63 = vector.shape_cast %62 : vector<1x8x1xf32> to vector<8x1xf32>
    %64 = arith.mulf %46, %59 : vector<8x1xf32>
    %65 = arith.subf %63, %64 : vector<8x1xf32>
    %66 = vector.broadcast %65 : vector<8x1xf32> to vector<8x256xf32>
    %67 = arith.addf %61, %66 : vector<8x256xf32>
    %c2_i32 = arith.constant 2 : i32
    %68 = vector.broadcast %c2_i32 : i32 to vector<1x256xi32>
    %69 = arith.cmpi sge, %16, %68 : vector<1x256xi32>
    %c2_i32_26 = arith.constant 2 : i32
    %70 = tpu.dynamic_rotate %67 by %c2_i32_26 dim 1 : vector<8x256xf32>, i32 -> vector<8x256xf32>
    %cst_27 = arith.constant 0.000000e+00 : f32
    %71 = vector.shape_cast %69 : vector<1x256xi1> to vector<1x256xi1>
    %72 = vector.broadcast %71 : vector<1x256xi1> to vector<8x256xi1>
    %73 = vector.broadcast %cst_27 : f32 to vector<8x256xf32>
    %74 = arith.select %72, %70, %73 : vector<8x256xi1>, vector<8x256xf32>
    %c126_i32 = arith.constant 126 : i32
    %75 = vector.broadcast %c126_i32 : i32 to vector<1x256xi32>
    %76 = arith.cmpi slt, %16, %75 : vector<1x256xi32>
    %c254_i32 = arith.constant 254 : i32
    %77 = tpu.dynamic_rotate %67 by %c254_i32 dim 1 : vector<8x256xf32>, i32 -> vector<8x256xf32>
    %cst_28 = arith.constant 0.000000e+00 : f32
    %78 = vector.shape_cast %76 : vector<1x256xi1> to vector<1x256xi1>
    %79 = vector.broadcast %78 : vector<1x256xi1> to vector<8x256xi1>
    %80 = vector.broadcast %cst_28 : f32 to vector<8x256xf32>
    %81 = arith.select %79, %77, %80 : vector<8x256xi1>, vector<8x256xf32>
    %82 = tpu.concatenate %74, %67, %81 in 0 : vector<8x256xf32>, vector<8x256xf32>, vector<8x256xf32> -> vector<24x256xf32>
    %c1 = arith.constant 1 : index
    %c0_29 = arith.constant 0 : index
    %c0_30 = arith.constant 0 : index
    %83 = vector.load %arg1[%c1, %c0_29, %c0_30] : memref<3x8x24xf32, #tpu.memory_space<vmem>>, vector<1x8x24xf32>
    %84 = vector.shape_cast %83 : vector<1x8x24xf32> to vector<8x24xf32>
    %cst_31 = arith.constant dense<0.000000e+00> : vector<8x256xf32>
    %85 = tpu.matmul %84, %82, %cst_31 {dimension_numbers = #tpu.dot_dimension_numbers<[1], [0], [0], [1], [0, 0, 1, 1], [], []>} : vector<8x24xf32>, vector<24x256xf32>, vector<8x256xf32> -> vector<8x256xf32>
    %c1_32 = arith.constant 1 : index
    %c0_33 = arith.constant 0 : index
    %c0_34 = arith.constant 0 : index
    %86 = vector.load %arg2[%c1_32, %c0_33, %c0_34] : memref<3x8x1xf32, #tpu.memory_space<vmem>>, vector<1x8x1xf32>
    %87 = vector.shape_cast %86 : vector<1x8x1xf32> to vector<8x1xf32>
    %88 = vector.broadcast %87 : vector<8x1xf32> to vector<8x256xf32>
    %89 = arith.addf %85, %88 : vector<8x256xf32>
    %cst_35 = arith.constant 2.000000e-01 : f32
    %90 = vector.broadcast %cst_35 : f32 to vector<8x256xf32>
    %91 = arith.mulf %90, %89 : vector<8x256xf32>
    %92 = arith.maximumf %89, %91 : vector<8x256xf32>
    %cst_36 = arith.constant dense<0.000000e+00> : vector<8xf32>
    %93 = vector.multi_reduction <add>, %92, %cst_36 [1] : vector<8x256xf32> to vector<8xf32>
    %94 = vector.shape_cast %93 : vector<8xf32> to vector<8x1xf32>
    %cst_37 = arith.constant 3.906250e-03 : f32
    %95 = vector.broadcast %cst_37 : f32 to vector<8x1xf32>
    %96 = arith.mulf %94, %95 : vector<8x1xf32>
    %97 = arith.mulf %92, %92 : vector<8x256xf32>
    %cst_38 = arith.constant dense<0.000000e+00> : vector<8xf32>
    %98 = vector.multi_reduction <add>, %97, %cst_38 [1] : vector<8x256xf32> to vector<8xf32>
    %99 = vector.shape_cast %98 : vector<8xf32> to vector<8x1xf32>
    %cst_39 = arith.constant 3.906250e-03 : f32
    %100 = vector.broadcast %cst_39 : f32 to vector<8x1xf32>
    %101 = arith.mulf %99, %100 : vector<8x1xf32>
    %102 = arith.mulf %96, %96 : vector<8x1xf32>
    %103 = arith.subf %101, %102 : vector<8x1xf32>
    %c1_40 = arith.constant 1 : index
    %c0_41 = arith.constant 0 : index
    %c0_42 = arith.constant 0 : index
    %104 = vector.load %arg3[%c1_40, %c0_41, %c0_42] : memref<3x8x1xf32, #tpu.memory_space<vmem>>, vector<1x8x1xf32>
    %105 = vector.shape_cast %104 : vector<1x8x1xf32> to vector<8x1xf32>
    %cst_43 = arith.constant 9.99999974E-6 : f32
    %106 = vector.broadcast %cst_43 : f32 to vector<8x1xf32>
    %107 = arith.addf %103, %106 : vector<8x1xf32>
    %108 = math.rsqrt %107 : vector<8x1xf32>
    %109 = arith.mulf %105, %108 : vector<8x1xf32>
    %110 = vector.broadcast %109 : vector<8x1xf32> to vector<8x256xf32>
    %111 = arith.mulf %92, %110 : vector<8x256xf32>
    %c1_44 = arith.constant 1 : index
    %c0_45 = arith.constant 0 : index
    %c0_46 = arith.constant 0 : index
    %112 = vector.load %arg4[%c1_44, %c0_45, %c0_46] : memref<3x8x1xf32, #tpu.memory_space<vmem>>, vector<1x8x1xf32>
    %113 = vector.shape_cast %112 : vector<1x8x1xf32> to vector<8x1xf32>
    %114 = arith.mulf %96, %109 : vector<8x1xf32>
    %115 = arith.subf %113, %114 : vector<8x1xf32>
    %116 = vector.broadcast %115 : vector<8x1xf32> to vector<8x256xf32>
    %117 = arith.addf %111, %116 : vector<8x256xf32>
    %c4_i32 = arith.constant 4 : i32
    %118 = vector.broadcast %c4_i32 : i32 to vector<1x256xi32>
    %119 = arith.cmpi sge, %16, %118 : vector<1x256xi32>
    %c4_i32_47 = arith.constant 4 : i32
    %120 = tpu.dynamic_rotate %117 by %c4_i32_47 dim 1 : vector<8x256xf32>, i32 -> vector<8x256xf32>
    %cst_48 = arith.constant 0.000000e+00 : f32
    %121 = vector.shape_cast %119 : vector<1x256xi1> to vector<1x256xi1>
    %122 = vector.broadcast %121 : vector<1x256xi1> to vector<8x256xi1>
    %123 = vector.broadcast %cst_48 : f32 to vector<8x256xf32>
    %124 = arith.select %122, %120, %123 : vector<8x256xi1>, vector<8x256xf32>
    %c124_i32 = arith.constant 124 : i32
    %125 = vector.broadcast %c124_i32 : i32 to vector<1x256xi32>
    %126 = arith.cmpi slt, %16, %125 : vector<1x256xi32>
    %c252_i32 = arith.constant 252 : i32
    %127 = tpu.dynamic_rotate %117 by %c252_i32 dim 1 : vector<8x256xf32>, i32 -> vector<8x256xf32>
    %cst_49 = arith.constant 0.000000e+00 : f32
    %128 = vector.shape_cast %126 : vector<1x256xi1> to vector<1x256xi1>
    %129 = vector.broadcast %128 : vector<1x256xi1> to vector<8x256xi1>
    %130 = vector.broadcast %cst_49 : f32 to vector<8x256xf32>
    %131 = arith.select %129, %127, %130 : vector<8x256xi1>, vector<8x256xf32>
    %132 = tpu.concatenate %124, %117, %131 in 0 : vector<8x256xf32>, vector<8x256xf32>, vector<8x256xf32> -> vector<24x256xf32>
    %c2 = arith.constant 2 : index
    %c0_50 = arith.constant 0 : index
    %c0_51 = arith.constant 0 : index
    %133 = vector.load %arg1[%c2, %c0_50, %c0_51] : memref<3x8x24xf32, #tpu.memory_space<vmem>>, vector<1x8x24xf32>
    %134 = vector.shape_cast %133 : vector<1x8x24xf32> to vector<8x24xf32>
    %cst_52 = arith.constant dense<0.000000e+00> : vector<8x256xf32>
    %135 = tpu.matmul %134, %132, %cst_52 {dimension_numbers = #tpu.dot_dimension_numbers<[1], [0], [0], [1], [0, 0, 1, 1], [], []>} : vector<8x24xf32>, vector<24x256xf32>, vector<8x256xf32> -> vector<8x256xf32>
    %c2_53 = arith.constant 2 : index
    %c0_54 = arith.constant 0 : index
    %c0_55 = arith.constant 0 : index
    %136 = vector.load %arg2[%c2_53, %c0_54, %c0_55] : memref<3x8x1xf32, #tpu.memory_space<vmem>>, vector<1x8x1xf32>
    %137 = vector.shape_cast %136 : vector<1x8x1xf32> to vector<8x1xf32>
    %138 = vector.broadcast %137 : vector<8x1xf32> to vector<8x256xf32>
    %139 = arith.addf %135, %138 : vector<8x256xf32>
    %cst_56 = arith.constant 2.000000e-01 : f32
    %140 = vector.broadcast %cst_56 : f32 to vector<8x256xf32>
    %141 = arith.mulf %140, %139 : vector<8x256xf32>
    %142 = arith.maximumf %139, %141 : vector<8x256xf32>
    %cst_57 = arith.constant dense<0.000000e+00> : vector<8xf32>
    %143 = vector.multi_reduction <add>, %142, %cst_57 [1] : vector<8x256xf32> to vector<8xf32>
    %144 = vector.shape_cast %143 : vector<8xf32> to vector<8x1xf32>
    %cst_58 = arith.constant 3.906250e-03 : f32
    %145 = vector.broadcast %cst_58 : f32 to vector<8x1xf32>
    %146 = arith.mulf %144, %145 : vector<8x1xf32>
    %147 = arith.mulf %142, %142 : vector<8x256xf32>
    %cst_59 = arith.constant dense<0.000000e+00> : vector<8xf32>
    %148 = vector.multi_reduction <add>, %147, %cst_59 [1] : vector<8x256xf32> to vector<8xf32>
    %149 = vector.shape_cast %148 : vector<8xf32> to vector<8x1xf32>
    %cst_60 = arith.constant 3.906250e-03 : f32
    %150 = vector.broadcast %cst_60 : f32 to vector<8x1xf32>
    %151 = arith.mulf %149, %150 : vector<8x1xf32>
    %152 = arith.mulf %146, %146 : vector<8x1xf32>
    %153 = arith.subf %151, %152 : vector<8x1xf32>
    %c2_61 = arith.constant 2 : index
    %c0_62 = arith.constant 0 : index
    %c0_63 = arith.constant 0 : index
    %154 = vector.load %arg3[%c2_61, %c0_62, %c0_63] : memref<3x8x1xf32, #tpu.memory_space<vmem>>, vector<1x8x1xf32>
    %155 = vector.shape_cast %154 : vector<1x8x1xf32> to vector<8x1xf32>
    %cst_64 = arith.constant 9.99999974E-6 : f32
    %156 = vector.broadcast %cst_64 : f32 to vector<8x1xf32>
    %157 = arith.addf %153, %156 : vector<8x1xf32>
    %158 = math.rsqrt %157 : vector<8x1xf32>
    %159 = arith.mulf %155, %158 : vector<8x1xf32>
    %160 = vector.broadcast %159 : vector<8x1xf32> to vector<8x256xf32>
    %161 = arith.mulf %142, %160 : vector<8x256xf32>
    %c2_65 = arith.constant 2 : index
    %c0_66 = arith.constant 0 : index
    %c0_67 = arith.constant 0 : index
    %162 = vector.load %arg4[%c2_65, %c0_66, %c0_67] : memref<3x8x1xf32, #tpu.memory_space<vmem>>, vector<1x8x1xf32>
    %163 = vector.shape_cast %162 : vector<1x8x1xf32> to vector<8x1xf32>
    %164 = arith.mulf %146, %159 : vector<8x1xf32>
    %165 = arith.subf %163, %164 : vector<8x1xf32>
    %166 = vector.broadcast %165 : vector<8x1xf32> to vector<8x256xf32>
    %167 = arith.addf %161, %166 : vector<8x256xf32>
    %c0_68 = arith.constant 0 : index
    %c0_69 = arith.constant 0 : index
    %168 = vector.load %arg5[%c0_68, %c0_69] : memref<8x256xf32, #tpu.memory_space<vmem>>, vector<8x256xf32>
    tpu.vector_store %arg5[%c0_68, %c0_69], %167 {strides = array<i32>} : memref<8x256xf32, #tpu.memory_space<vmem>>, vector<8x256xf32>,
    return
  }
}

</mosaic_0001>

<bundles_post_ra>
// kernel: stack_forward.1
= control target key start
LH: loop header
LB: loop body
LE: loop exit
PB: predicated region body
PF: predicated region fallthrough
CT: control target
= control target key end

     0   :  { %s581_s20 = smov 1   ;;  %s582_s21 = smov 127   ;;  %s688_s0 = inlined_call_operand.vmem [shape: f32[8,256], index: 0, kind: input, shape index: {}]   ;;  %s689_s1 = inlined_call_operand.vmem [shape: f32[3,8,24], index: 1, kind: input, shape index: {}]   ;;  %s690_s2 = inlined_call_operand.vmem [shape: f32[3,8,1], index: 2, kind: input, shape index: {}]   ;;  %s691_s3 = inlined_call_operand.vmem [shape: f32[3,8,1], index: 3, kind: input, shape index: {}]   ;;  %s692_s4 = inlined_call_operand.vmem [shape: f32[3,8,1], index: 4, kind: input, shape index: {}]   ;;  %s693_s5 = inlined_call_operand.hbm [shape: f32[8,256], index: 5, kind: output, shape index: {}]  }
   0x1   :  { %v48_v0 = vld [vmem:[%s688_s0] sm:$0xff] }
   0x2   :  { %52 = vrot.lane.b32.xlu1 %v48_v0, %s581_s20  ;;  %67 = vrot.lane.b32.xlu0 %v48_v0, %s582_s21 }
   0x3   :  { %10 = vsyncpa [#allocation3], 0  ;;  %v49_v1 = vld [vmem:[%s688_s0 + $0x8] sm:$0xff]  ;;  %v583_v2 = vmov 0.0   ;;  %v584_v3 = vmov 0   ;;  %v81_v4 = vld [vmem:[%s690_s2] sm:$0xff]  ;;  %v21_v5 = vlaneseq }
   0x4   :  { %155 = vmatprep.mubr.f32.mxu0 %v583_v2  ;;  %551 = vset.pattern.permute.xlu0 %v584_v3  ;;  %v80_v16 = vld [vmem:[%s689_s1] sm:$0xff]  ;;  %vm87_vm5 = vcmask 195584   ;;  %s585_s6 = smov 2   ;;  %s586_s7 = smov 126   ;;  %v525_v49 = vld [vmem:[%s690_s2 + $0x8] sm:$0xff] }
   0x5   :  { %552 = vset.pattern.permute.xlu1 %v584_v3  ;;  %305 = vmatprep.mubr.f32.mxu1 %v583_v2  ;;  %v629_v6 = vand.u32 127, %v21_v5  ;;  %v178_v38 = vld [vmem:[%s691_s3] sm:$0xff]  ;;  %v524_v59 = vld [vmem:[%s689_s1 + $0x8] sm:$0xff]  ;;  %s587_s16 = smov 124   ;;  %s588_s17 = smov 4  }
   0x6   :  { %54 = vrot.lane.b32.xlu1 %v49_v1, %s581_s20  ;;  %69 = vrot.lane.b32.xlu0 %v49_v1, %s582_s21  ;;  %v189_v41 = vld [vmem:[%s692_s4] sm:$0xff]  ;;  %s589_s24 = smov [#allocation2]  }
   0x7   :  { %v23_v7 = vadd.s32 128, %v629_v6  ;;  %vm65_vm0 = vcmp.lt.s32.totalorder %v629_v6, 127  ;;  %vm56_vm2 = vcmp.lt.s32.totalorder %v629_v6, 1  ;;  %vm50_vm4 = vcmp.ge.s32.totalorder %v629_v6, 1  ;;  %s511_s25 = sshll.u32 %s589_s24, 4  ;;  %s512_s25 = int_to_ptr.vmem [resolvable:$true] %s511_s25 }
   0x8   :  { %vm214_vm6 = vcmp.lt.s32.totalorder %v629_v6, 126  ;;  %vm205_vm8 = vcmp.lt.s32.totalorder %v629_v6, 2  ;;  %vm199_vm10 = vcmp.ge.s32.totalorder %v629_v6, 2  ;;  %vm366_vm11 = vcmp.lt.s32.totalorder %v629_v6, 124  ;;  %p564_p1 = scmp.lt.s32.totalorder %s512_s25, %s512_s25 }
   0x9   :  { %v632_v8 = vand.u32 127, %v23_v7  ;;  %vm357_vm13 = vcmp.lt.s32.totalorder %v629_v6, 4  ;;  %vm351_vm15 = vcmp.ge.s32.totalorder %v629_v6, 4 }
   0xa   :  { %84 = vperm.xlu0 %551, %v81_v4  }
   0xb   :  { %vm66_vm1 = vcmp.lt.s32.totalorder %v632_v8, 127  ;;  %vm51_vm3 = vcmp.ge.s32.totalorder %v632_v8, 1  ;;  %vm215_vm7 = vcmp.lt.s32.totalorder %v632_v8, 126  ;;  %vm200_vm9 = vcmp.ge.s32.totalorder %v632_v8, 2 }
   0xc   :  { %vm367_vm12 = vcmp.lt.s32.totalorder %v632_v8, 124  ;;  %vm352_vm14 = vcmp.ge.s32.totalorder %v632_v8, 4 }
  0x74   :  { %v53_v9 = vpop.permute.xlu1 %52  ;;  %v68_v10 = vpop.permute.xlu0 %67 }
  0x78   :  { %v70_v11 = vpop.permute.xlu0 %69  ;;  %v55_v14 = vpop.permute.xlu1 %54 }
  0x79   :  { %v73_v12 = vsel %vm65_vm0, %v70_v11, %v68_v10  ;;  %v72_v13 = vsel %vm65_vm0, %v68_v10, %v70_v11  ;;  %v57_v15 = vsel %vm56_vm2, %v53_v9, %v55_v14  ;;  %v58_v17 = vsel %vm56_vm2, %v55_v14, %v53_v9 }
  0x7a   :  { %519 = vmatprep.subr.msk.mxu0 %vm66_vm1, %v73_v12 }
  0x7b   :  { %520 = vmatpush1.msk.msra.mxu0 %vm65_vm0, %v72_v13 }
  0x7c   :  { %119 = vmatprep.subr.mxu0 %v49_v1 }
  0x7d   :  { %120 = vmatpush1.msra.mxu0 %v48_v0 }
  0x7e   :  { %521 = vmatprep.subr.msk.mxu0 %vm51_vm3, %v57_v15 }
  0x7f   :  { %522 = vmatpush1.msk.msra.mxu0 %vm50_vm4, %v58_v17 }
  0x80   :  { %523 = vmatmul.mubr.msk.f32.vlgmr.msra.gmra.mxu0 %vm87_vm5, %v80_v16 }
  0x81   :  { %457 = vmatprep.mubr.f32.mxu0 %v583_v2 }
  0x85   :  { %v85_v18 = vpop.permute.xlu0 %84 }
 0x140   :  { %v157_v19 = vpop.f32.mrf.mxu0 }
 0x141   :  { %v158_v20 = vadd.f32 %v157_v19, %v85_v18 }
 0x142   :  { %v159_v21 = vpop.f32.mrf.mxu0 }
 0x143   :  { %v162_v22 = vmul.f32 0.2, %v158_v20  ;;  %v160_v23 = vadd.f32 %v159_v21, %v85_v18  ;;  %v531_v18 = vld [vmem:[%s691_s3 + $0x8] sm:$0xff] }
 0x144   :  { %v532_v21 = vld [vmem:[%s692_s4 + $0x8] sm:$0xff] }
 0x145   :  { %v164_v24 = vmax.f32 %v158_v20, %v162_v22  ;;  %v163_v25 = vmul.f32 0.2, %v160_v23 }
 0x147   :  { %v165_v26 = vmax.f32 %v160_v23, %v163_v25  ;;  %v170_v28 = vmul.f32 %v164_v24, %v164_v24 }
 0x149   :  { %v166_v27 = vadd.f32 %v165_v26, %v164_v24  ;;  %v171_v29 = vmul.f32 %v165_v26, %v165_v26 }
 0x14b   :  { %167 = vadd.xlane.f32.xlu1 %v166_v27  ;;  %v172_v30 = vadd.f32 %v171_v29, %v170_v28 }
 0x14d   :  { %173 = vadd.xlane.f32.xlu0 %v172_v30  ;;  %v534_v30 = vld [vmem:[%s690_s2 + $0x10] sm:$0xff] }
 0x1d4   :  { %v168_v31 = vpop.xlane.xlu1 %167 }
 0x1d5   :  { %v169_v32 = vmul.f32 0.00390625, %v168_v31 }
 0x1d6   :  { %v174_v33 = vpop.xlane.xlu0 %173 }
 0x1d7   :  { %v176_v34 = vmul.f32 %v169_v32, %v169_v32  ;;  %v175_v35 = vmul.f32 0.00390625, %v174_v33 }
 0x1d9   :  { %v177_v36 = vsub.f32 %v175_v35, %v176_v34 }
 0x1db   :  { %v179_v37 = vadd.f32 1e-05, %v177_v36 }
 0x1dd   :  { %553 = vrsqrt.f32 %v179_v37 }
 0x1ea   :  { %v554_v39 = vpop.eup %553 }
 0x1eb   :  { %v181_v40 = vmul.f32 %v554_v39, %v178_v38  ;;  %v533_v39 = vld [vmem:[%s689_s1 + $0x10] sm:$0xff] }
 0x1ed   :  { %184 = vperm.xlu1 %552, %v181_v40   ;;  %v190_v42 = vmul.f32 %v181_v40, %v169_v32 }
 0x1ef   :  { %v191_v43 = vsub.f32 %v189_v41, %v190_v42 }
 0x1f1   :  { %194 = vperm.xlu0 %551, %v191_v43  }
 0x268   :  { %v185_v44 = vpop.permute.xlu1 %184 }
 0x269   :  { %v187_v45 = vmul.f32 %v185_v44, %v164_v24  ;;  %v188_v48 = vmul.f32 %v185_v44, %v165_v26 }
 0x26c   :  { %v195_v46 = vpop.permute.xlu0 %194 }
 0x26d   :  { %v197_v47 = vadd.f32 %v195_v46, %v187_v45  ;;  %v198_v50 = vadd.f32 %v195_v46, %v188_v48 }
 0x26f   :  { %201 = vrot.lane.b32.xlu0 %v197_v47, %s585_s6  ;;  %216 = vrot.lane.b32.xlu1 %v197_v47, %s586_s7 }
 0x273   :  { %235 = vperm.xlu0 %551, %v525_v49   ;;  %218 = vrot.lane.b32.xlu1 %v198_v50, %s586_s7 }
 0x277   :  { %203 = vrot.lane.b32.xlu1 %v198_v50, %s585_s6 }
 0x2e1   :  { %v217_v51 = vpop.permute.xlu1 %216  ;;  %v202_v55 = vpop.permute.xlu0 %201 }
 0x2e5   :  { %v219_v52 = vpop.permute.xlu1 %218 }
 0x2e6   :  { %v222_v53 = vsel %vm214_vm6, %v219_v52, %v217_v51  ;;  %v221_v54 = vsel %vm214_vm6, %v217_v51, %v219_v52 }
 0x2e7   :  { %526 = vmatprep.subr.msk.mxu1 %vm215_vm7, %v222_v53 }
 0x2e8   :  { %527 = vmatpush1.msk.msra.mxu1 %vm214_vm6, %v221_v54 }
 0x2e9   :  { %269 = vmatprep.subr.mxu1 %v198_v50  ;;  %v204_v56 = vpop.permute.xlu1 %203 }
 0x2ea   :  { %v206_v57 = vsel %vm205_vm8, %v202_v55, %v204_v56  ;;  %v207_v58 = vsel %vm205_vm8, %v204_v56, %v202_v55  ;;  %270 = vmatpush1.msra.mxu1 %v197_v47 }
 0x2eb   :  { %528 = vmatprep.subr.msk.mxu1 %vm200_vm9, %v206_v57 }
 0x2ec   :  { %529 = vmatpush1.msk.msra.mxu1 %vm199_vm10, %v207_v58  ;;  %v540_v58 = vld [vmem:[%s691_s3 + $0x10] sm:$0xff]  ;;  %s559_s3 = scalar_lea.vmem %s512_s25, 256 }
 0x2ed   :  { %530 = vmatmul.mubr.msk.f32.vlgmr.msra.gmra.mxu1 %vm87_vm5, %v524_v59  ;;  %p560_p0 = scmp.ne.s32.totalorder %s512_s25, %s559_s3  ;;  %p565_p2 = scmp.lt.s32.totalorder %s559_s3, %s559_s3 }
 0x2ee   :  { %v236_v60 = vpop.permute.xlu0 %235 }
 0x2ef   :  { %p566_p3 = por %p565_p2, %p564_p1 }
 0x2f1   :  { %p567_p4 = pnand %p566_p3, %p560_p0 }
 0x3ad   :  { %v307_v61 = vpop.f32.mrf.mxu1 }
 0x3ae   :  { %v308_v62 = vadd.f32 %v307_v61, %v236_v60  ;;  %v541_v61 = vld [vmem:[%s692_s4 + $0x10] sm:$0xff] }
 0x3af   :  { %v309_v63 = vpop.f32.mrf.mxu1 }
 0x3b0   :  { %v312_v0 = vmul.f32 0.2, %v308_v62  ;;  %v310_v1 = vadd.f32 %v309_v63, %v236_v60 }
 0x3b2   :  { %v314_v2 = vmax.f32 %v308_v62, %v312_v0  ;;  %v313_v3 = vmul.f32 0.2, %v310_v1 }
 0x3b4   :  { %v315_v4 = vmax.f32 %v310_v1, %v313_v3  ;;  %v320_v7 = vmul.f32 %v314_v2, %v314_v2 }
 0x3b6   :  { %v316_v5 = vadd.f32 %v315_v4, %v314_v2  ;;  %v321_v9 = vmul.f32 %v315_v4, %v315_v4 }
 0x3b8   :  { %317 = vadd.xlane.f32.xlu1 %v316_v5  ;;  %v322_v10 = vadd.f32 %v321_v9, %v320_v7 }
 0x3ba   :  { %323 = vadd.xlane.f32.xlu0 %v322_v10 }
 0x441   :  { %v318_v11 = vpop.xlane.xlu1 %317 }
 0x442   :  { %v319_v12 = vmul.f32 0.00390625, %v318_v11 }
 0x443   :  { %v324_v13 = vpop.xlane.xlu0 %323 }
 0x444   :  { %v326_v14 = vmul.f32 %v319_v12, %v319_v12  ;;  %v325_v15 = vmul.f32 0.00390625, %v324_v13 }
 0x446   :  { %v327_v16 = vsub.f32 %v325_v15, %v326_v14 }
 0x448   :  { %v330_v17 = vadd.f32 1e-05, %v327_v16 }
 0x44a   :  { %555 = vrsqrt.f32 %v330_v17 }
 0x457   :  { %v556_v19 = vpop.eup %555 }
 0x458   :  { %v332_v20 = vmul.f32 %v556_v19, %v531_v18 }
 0x45a   :  { %335 = vperm.xlu0 %551, %v332_v20   ;;  %v342_v22 = vmul.f32 %v332_v20, %v319_v12 }
 0x45c   :  { %v343_v23 = vsub.f32 %v532_v21, %v342_v22 }
 0x45e   :  { %346 = vperm.xlu1 %552, %v343_v23  }
 0x4d5   :  { %v336_v24 = vpop.permute.xlu0 %335 }
 0x4d6   :  { %v338_v25 = vmul.f32 %v336_v24, %v314_v2  ;;  %v339_v26 = vmul.f32 %v336_v24, %v315_v4 }
 0x4d9   :  { %v347_v27 = vpop.permute.xlu1 %346 }
 0x4da   :  { %v349_v28 = vadd.f32 %v347_v27, %v338_v25  ;;  %v350_v29 = vadd.f32 %v347_v27, %v339_v26 }
 0x4dc   :  { %370 = vrot.lane.b32.xlu0 %v350_v29, %s587_s16  ;;  %368 = vrot.lane.b32.xlu1 %v349_v28, %s587_s16 }
 0x4e0   :  { %355 = vrot.lane.b32.xlu0 %v350_v29, %s588_s17  ;;  %353 = vrot.lane.b32.xlu1 %v349_v28, %s588_s17 }
 0x4e4   :  { %387 = vperm.xlu1 %552, %v534_v30  }
 0x54e   :  { %v371_v31 = vpop.permute.xlu0 %370  ;;  %v369_v32 = vpop.permute.xlu1 %368 }
 0x54f   :  { %v373_v33 = vsel %vm366_vm11, %v369_v32, %v371_v31  ;;  %v374_v34 = vsel %vm366_vm11, %v371_v31, %v369_v32 }
 0x550   :  { %535 = vmatprep.subr.msk.mxu0 %vm367_vm12, %v374_v34 }
 0x551   :  { %536 = vmatpush1.msk.msra.mxu0 %vm366_vm11, %v373_v33 }
 0x552   :  { %v356_v35 = vpop.permute.xlu0 %355  ;;  %421 = vmatprep.subr.mxu0 %v350_v29  ;;  %v354_v36 = vpop.permute.xlu1 %353 }
 0x553   :  { %v358_v37 = vsel %vm357_vm13, %v354_v36, %v356_v35  ;;  %v359_v38 = vsel %vm357_vm13, %v356_v35, %v354_v36  ;;  %422 = vmatpush1.msra.mxu0 %v349_v28 }
 0x554   :  { %537 = vmatprep.subr.msk.mxu0 %vm352_vm14, %v358_v37 }
 0x555   :  { %538 = vmatpush1.msk.msra.mxu0 %vm351_vm15, %v359_v38 }
 0x556   :  { %539 = vmatmul.mubr.msk.f32.vlgmr.msra.gmra.mxu0 %vm87_vm5, %v533_v39 }
 0x55f   :  { %v388_v40 = vpop.permute.xlu1 %387 }
 0x616   :  { %v459_v41 = vpop.f32.mrf.mxu0 }
 0x617   :  { %v460_v42 = vadd.f32 %v459_v41, %v388_v40 }
 0x618   :  { %v461_v8 = vpop.f32.mrf.mxu0 }
 0x619   :  { %v464_v43 = vmul.f32 0.2, %v460_v42  ;;  %v462_v44 = vadd.f32 %v461_v8, %v388_v40 }
 0x61b   :  { %v466_v45 = vmax.f32 %v460_v42, %v464_v43  ;;  %v465_v46 = vmul.f32 0.2, %v462_v44 }
 0x61d   :  { %v467_v6 = vmax.f32 %v462_v44, %v465_v46  ;;  %v472_v48 = vmul.f32 %v466_v45, %v466_v45 }
 0x61f   :  { %v468_v47 = vadd.f32 %v467_v6, %v466_v45  ;;  %v473_v49 = vmul.f32 %v467_v6, %v467_v6 }
 0x621   :  { %469 = vadd.xlane.f32.xlu0 %v468_v47  ;;  %v474_v50 = vadd.f32 %v473_v49, %v472_v48 }
 0x623   :  { %475 = vadd.xlane.f32.xlu1 %v474_v50 }
 0x6aa   :  { %v470_v51 = vpop.xlane.xlu0 %469 }
 0x6ab   :  { %v471_v52 = vmul.f32 0.00390625, %v470_v51 }
 0x6ac   :  { %v476_v53 = vpop.xlane.xlu1 %475 }
 0x6ad   :  { %v478_v54 = vmul.f32 %v471_v52, %v471_v52  ;;  %v477_v55 = vmul.f32 0.00390625, %v476_v53 }
 0x6af   :  { %v479_v56 = vsub.f32 %v477_v55, %v478_v54 }
 0x6b1   :  { %v482_v57 = vadd.f32 1e-05, %v479_v56 }
 0x6b3   :  { %557 = vrsqrt.f32 %v482_v57 }
 0x6c0   :  { %v558_v59 = vpop.eup %557 }
 0x6c1   :  { %v484_v60 = vmul.f32 %v558_v59, %v540_v58 }
 0x6c3   :  { %487 = vperm.xlu0 %551, %v484_v60   ;;  %v494_v62 = vmul.f32 %v484_v60, %v471_v52 }
 0x6c5   :  { %v495_v63 = vsub.f32 %v541_v61, %v494_v62 }
 0x6c7   :  { %498 = vperm.xlu1 %552, %v495_v63  }
 0x73e   :  { %v488_v0 = vpop.permute.xlu0 %487 }
 0x73f   :  { %v490_v1 = vmul.f32 %v488_v0, %v466_v45  ;;  %v491_v2 = vmul.f32 %v488_v0, %v467_v6 }
 0x742   :  { %v499_v3 = vpop.permute.xlu1 %498 }
 0x743   :  { %v501_v4 = vadd.f32 %v499_v3, %v490_v1  ;;  %v502_v5 = vadd.f32 %v499_v3, %v491_v2 }
 0x745   :  { %503 = vst [vmem:[#allocation2] sm:$0xff] %v501_v4  ;;  %504 = vst [vmem:[#allocation2 + $0x8] sm:$0xff] %v502_v5 }
 0x746   :  { %570 = shalt.err (!%p567_p4)
}
 0x747   :  { %514 = dma.vmem_to_hbm [thread:$0]  %s512_s25, 256, %s693_s5, [#allocation3]  }
 0x748   :  { %579 = dma.done.wait [#allocation3], 256  }
 0x749   :  { %580 = vsyncadd [#allocation3], 4294967040 }
 0x74a   :  { %518 = vsyncpa [#allocation3], 1 }

</bundles_post_ra>
